<compile_context>
chip_gen: v6e
topology: v6e:2x2x1
jax: 0.10.0
libtpu: 0.0.40
codegen_flags: <defaults>
</compile_context>

<pallas_src>
import jax
import jax.numpy as jnp
from jax.experimental import pallas as pl
from jax.experimental.pallas import tpu as pltpu


def _sigmoid_kernel(x_ref, o_ref):
    x = x_ref[...].astype(jnp.float32)
    # sigmoid(x) = 0.5 * (tanh(0.5 * x) + 1) — single EUP transcendental.
    y = 0.5 * (jnp.tanh(0.5 * x) + 1.0)
    o_ref[...] = y.astype(o_ref.dtype)


def sigmoid_pallas(x):
    """Apply sigmoid elementwise to an NCHW tensor of shape [N, C, 1, 1]."""
    n, c, h, w = x.shape
    x2d = x.reshape(n, c * h * w)  # [N, C] — channels on the lane axis

    out2d = pl.pallas_call(
        _sigmoid_kernel,
        out_shape=jax.ShapeDtypeStruct(x2d.shape, x2d.dtype),
        in_specs=[pl.BlockSpec(memory_space=pltpu.MemorySpace.VMEM)],
        out_specs=pl.BlockSpec(memory_space=pltpu.MemorySpace.VMEM),
        input_output_aliases={0: 0},
    )(x2d)

    return out2d.reshape(n, c, h, w)


if __name__ == "__main__":
    key = jax.random.PRNGKey(0)
    # Shape implied by the module's forward: [1, 672, 1, 1]
    x144 = jax.random.normal(key, (1, 672, 1, 1), dtype=jnp.float32)

    # Reference computed first (plain JAX / XLA).
    ref = jax.nn.sigmoid(x144)

    y = sigmoid_pallas(x144)
    jax.block_until_ready(y)

    assert y.shape == (1, 672, 1, 1)
    assert jnp.allclose(y, ref, atol=1e-6, rtol=1e-5)

    print("KERNEL_OK")
</pallas_src>

<mosaic_0001>
module attributes {stable_mosaic.version = 11 : i64} {
  func.func @_sigmoid_kernel(%arg0: memref<1x672xf32, #tpu.memory_space<vmem>>, %arg1: memref<1x672xf32, #tpu.memory_space<vmem>>) attributes {dimension_semantics = [], scalar_prefetch = 0 : i64, scratch_operands = 0 : i64, tpu.core_type = #tpu.core_type<tc>} {
    %c0 = arith.constant 0 : index
    %c0_0 = arith.constant 0 : index
    %0 = vector.load %arg0[%c0, %c0_0] : memref<1x672xf32, #tpu.memory_space<vmem>>, vector<1x672xf32>
    %cst = arith.constant 5.000000e-01 : f32
    %1 = vector.broadcast %cst : f32 to vector<1x672xf32>
    %2 = arith.mulf %1, %0 : vector<1x672xf32>
    %3 = math.tanh %2 : vector<1x672xf32>
    %cst_1 = arith.constant 1.000000e+00 : f32
    %4 = vector.broadcast %cst_1 : f32 to vector<1x672xf32>
    %5 = arith.addf %3, %4 : vector<1x672xf32>
    %cst_2 = arith.constant 5.000000e-01 : f32
    %6 = vector.broadcast %cst_2 : f32 to vector<1x672xf32>
    %7 = arith.mulf %6, %5 : vector<1x672xf32>
    %c0_3 = arith.constant 0 : index
    %c0_4 = arith.constant 0 : index
    %8 = vector.load %arg1[%c0_3, %c0_4] : memref<1x672xf32, #tpu.memory_space<vmem>>, vector<1x672xf32>
    tpu.vector_store %arg1[%c0_3, %c0_4], %7 {strides = array<i32>} : memref<1x672xf32, #tpu.memory_space<vmem>>, vector<1x672xf32>,
    return
  }
}

</mosaic_0001>

<bundles_post_ra>
// kernel: tpu_custom_call.1
= control target key start
LH: loop header
LB: loop body
LE: loop exit
PB: predicated region body
PF: predicated region fallthrough
CT: control target
= control target key end

     0   :  { %6 = vsyncpa [#allocation3], 0  ;;  %s112_s0 = inlined_call_operand.hbm [shape: f32[1,672], index: 0, kind: input, shape index: {}, may-alias: {0,1}]   ;;  %s113_s1 = inlined_call_operand.hbm [shape: f32[1,672], index: 1, kind: output, shape index: {}, may-alias: {0,1}]  }
   0x1   :  { %7 = vsyncpa [#allocation4], 0  ;;  %s94_s6 = smov [#allocation2]  }
   0x2   :  { %s14_s7 = sshll.u32 %s94_s6, 4  ;;  %s15_s7 = int_to_ptr.vmem [resolvable:$true] %s14_s7 }
   0x3   :  { %s58_s8 = scalar_lea.vmem %s15_s7, 96  ;;  %p63_p1 = scmp.lt.s32.totalorder %s15_s7, %s15_s7 }
   0x4   :  { %p59_p0 = scmp.ne.s32.totalorder %s15_s7, %s58_s8  ;;  %p64_p2 = scmp.lt.s32.totalorder %s58_s8, %s58_s8 }
   0x6   :  { %p65_p3 = por %p64_p2, %p63_p1 }
   0x8   :  { %p66_p4 = pnand %p65_p3, %p59_p0 }
   0xa   :  { %69 = shalt.err (!%p66_p4)
}
   0xb   :  { %17 = dma.hbm_to_vmem [thread:$0]  %s112_s0, 96, %s15_s7, [#allocation3]  }
   0xc   :  { %90 = dma.done.wait [#allocation3], 96  }
   0xd   :  { %91 = vsyncadd [#allocation3], 4294967200  ;;  %v21_v0 = vld [vmem:[#allocation2] sm:$0x3f]  ;;  %v26_v2 = vlaneseq  ;;  %s95_s11 = smov [#allocation5]  }
   0xe   :  { %v22_v1 = vmul.f32 0.5, %v21_v0  ;;  %s37_s12 = sshll.u32 %s95_s11, 4  ;;  %s38_s12 = int_to_ptr.vmem [resolvable:$true] %s37_s12 }
   0xf   :  { %vm28_vm0 = vcmp.lt.s32.totalorder %v26_v2, 672  ;;  %s70_s13 = scalar_lea.vmem %s38_s12, 96  ;;  %p75_p6 = scmp.lt.s32.totalorder %s38_s12, %s38_s12 }
  0x10   :  { %48 = vtanh.f32 %v22_v1  ;;  %p71_p5 = scmp.ne.s32.totalorder %s38_s12, %s70_s13  ;;  %p76_p7 = scmp.lt.s32.totalorder %s70_s13, %s70_s13 }
  0x12   :  { %p77_p8 = por %p76_p7, %p75_p6 }
  0x14   :  { %p78_p9 = pnand %p77_p8, %p71_p5 }
  0x1d   :  { %v49_v3 = vpop.eup %48 }
  0x1e   :  { %v24_v4 = vadd.f32 1.0, %v49_v3 }
  0x20   :  { %v25_v5 = vmul.f32 0.5, %v24_v4 }
  0x22   :  { %30 = vst.msk [vmem:[#allocation5] sm:$0x3f] %vm28_vm0, %v25_v5 }
  0x23   :  { %81 = shalt.err (!%p78_p9)
}
  0x24   :  { %40 = dma.vmem_to_hbm [thread:$0]  %s38_s12, 96, %s113_s1, [#allocation4]  }
  0x25   :  { %92 = dma.done.wait [#allocation4], 96  }
  0x26   :  { %93 = vsyncadd [#allocation4], 4294967200 }
  0x27   :  { %44 = vsyncpa [#allocation3], 1 }
  0x28   :  { %45 = vsyncpa [#allocation4], 1 }

</bundles_post_ra>
